<compile_context>
chip_gen: v7x
topology: tpu7x:2x2x1
jax: 0.10.0
libtpu: 0.0.40
codegen_flags: <defaults>
</compile_context>

<pallas_src>
import jax
import jax.numpy as jnp
from jax.experimental import pallas as pl
from jax.experimental.pallas import tpu as pltpu


def _round_up(n, m):
    return ((n + m - 1) // m) * m


def _vmem_budget_and_tb_cap():
    """Generation-dependent VMEM ceiling and max batch tile."""
    try:
        kind = jax.devices()[0].device_kind.lower()
    except Exception:  # pragma: no cover - defensive
        kind = ""
    if "v5" in kind or "v6" in kind:
        # 128 MiB physical VMEM parts: bigger tiles amortize per-step overhead.
        return 100 * 1024 * 1024, 1024
    # v7x (64 MiB physical) or unknown backend: stay conservative.
    return 56 * 1024 * 1024, 512


def pad_logreg_params(w, b):
    """One-time (out of the hot path) lane-dense padding of the static parameters.

    Pads the class axis up to a multiple of 128. Padded weight columns are 0 and padded
    bias entries are -1e30, so exp() underflows to 0 and padded classes contribute nothing
    to the softmax denominator.
    """
    D, C = w.shape
    assert b.shape == (1, C)
    C_pad = max(128, _round_up(C, 128))
    if C_pad != C:
        w = jnp.pad(w, ((0, 0), (0, C_pad - C)))
        b = jnp.pad(b, ((0, 0), (0, C_pad - C)), constant_values=-1e30)
    return w, b, C


def logreg_kernel(x_ref, w_ref, b_ref, o_ref):
    # Linear: (TB, D) @ (D, C_pad) + (1, C_pad), accumulated in f32 on the MXU.
    logits = jnp.dot(x_ref[...], w_ref[...],
                     preferred_element_type=jnp.float32) + b_ref[...]
    # Softmax over dim=1 (class axis), numerically stabilized — matches nn.Softmax(dim=1).
    m = jnp.max(logits, axis=1, keepdims=True)
    e = jnp.exp(logits - m)
    denom = jnp.sum(e, axis=1, keepdims=True)
    # Exact divide so each row sums to 1 (approx reciprocal broke the normalization check).
    o_ref[...] = (e / denom).astype(o_ref.dtype)


def logistic_regression(x, w_pad, b_pad, num_classes, *, use_bf16_operands=False):
    """x: (B, D) f32, w_pad: (D, C_pad) f32, b_pad: (1, C_pad) f32 -> (B, C) f32 probs.

    w_pad / b_pad come from pad_logreg_params (lane-dense class axis, padded once).
    """
    B, D = x.shape
    D2, C_pad = w_pad.shape
    assert D == D2 and b_pad.shape == (1, C_pad) and num_classes <= C_pad

    if use_bf16_operands:
        # Halves streamed HBM bytes; dot still accumulates in f32. Re-check tolerances.
        x = x.astype(jnp.bfloat16)
        w_pad = w_pad.astype(jnp.bfloat16)
    dsz = jnp.dtype(x.dtype).itemsize

    vmem_ceiling, tb_cap = _vmem_budget_and_tb_cap()

    # Pad batch only to a sublane multiple of 8 (NOT to a tile multiple).
    B_pad = _round_up(B, 8)

    # Aim for >=2 grid steps so the "parallel" batch axis can use both v7x TensorCores.
    tb_target = min(tb_cap, max(8, _round_up(pl.cdiv(B_pad, 2), 8)))

    # Fit the footprint: double-buffered x/out tiles + single-buffered resident W/b.
    fixed_bytes = D * C_pad * dsz + C_pad * dsz
    per_row_bytes = 2 * (D * dsz + C_pad * 4)  # x tile (input dtype) + f32 out tile
    tb_fit = max(8, ((vmem_ceiling - fixed_bytes) // max(per_row_bytes, 1)) // 8 * 8)
    TB = max(8, min(tb_target, tb_fit))

    if B_pad != B:
        x = jnp.pad(x, ((0, B_pad - B), (0, 0)))

    grid = (pl.cdiv(B_pad, TB),)  # partial last block handled by Pallas

    out = pl.pallas_call(
        logreg_kernel,
        out_shape=jax.ShapeDtypeStruct((B_pad, C_pad), jnp.float32),
        grid_spec=pltpu.PrefetchScalarGridSpec(
            num_scalar_prefetch=0,
            grid=grid,
            in_specs=[
                # Streamed batch tiles (double-buffered by default).
                pl.BlockSpec((TB, D), lambda i: (i, 0)),
                # Weights / bias: constant block index -> keep a single VMEM buffer.
                pl.BlockSpec((D, C_pad), lambda i: (0, 0),
                             pipeline_mode=pl.Buffered(buffer_count=1)),
                pl.BlockSpec((1, C_pad), lambda i: (0, 0),
                             pipeline_mode=pl.Buffered(buffer_count=1)),
            ],
            out_specs=pl.BlockSpec((TB, C_pad), lambda i: (i, 0)),
        ),
        compiler_params=pltpu.CompilerParams(
            dimension_semantics=("parallel",),
            vmem_limit_bytes=vmem_ceiling,
        ),
    )(x, w_pad, b_pad)
    # Slice away batch padding and the padded (zero-probability) classes. If the consumer
    # can take the (B_pad, C_pad) buffer directly, skip this to save an HBM pass.
    return out[:B, :num_classes]


if __name__ == "__main__":
    # Shapes implied by the module: x (batch, input_dim), linear (input_dim -> output_dim).
    batch, input_dim, output_dim = 8, 32, 16

    key = jax.random.PRNGKey(0)
    kx, kw, kb = jax.random.split(key, 3)

    x = jax.random.normal(kx, (batch, input_dim), dtype=jnp.float32)
    # Deterministic parameter init (mimics nn.Linear's uniform(-1/sqrt(fan_in), 1/sqrt(fan_in))).
    bound = 1.0 / jnp.sqrt(jnp.float32(input_dim))
    w = jax.random.uniform(kw, (input_dim, output_dim), dtype=jnp.float32,
                           minval=-bound, maxval=bound)
    b = jax.random.uniform(kb, (1, output_dim), dtype=jnp.float32,
                           minval=-bound, maxval=bound)

    # One-time parameter padding (out of the hot path).
    w_pad, b_pad, n_classes = pad_logreg_params(w, b)

    out = logistic_regression(x, w_pad, b_pad, n_classes)
    out = jax.block_until_ready(out)

    # Reference: softmax(x @ W + b) in plain JAX.
    ref = jax.nn.softmax(x @ w + b, axis=1)
    assert out.shape == (batch, output_dim)
    assert jnp.allclose(out, ref, rtol=1e-3, atol=1e-3)
    row_sums = jnp.sum(out, axis=1)
    assert jnp.allclose(row_sums, jnp.ones((batch,), jnp.float32), atol=1e-3)

    print("KERNEL_OK")
</pallas_src>

<mosaic_0001>
module attributes {stable_mosaic.version = 11 : i64} {
  func.func @logreg_kernel(%arg0: i32, %arg1: memref<8x32xf32, #tpu.memory_space<vmem>>, %arg2: memref<32x128xf32, #tpu.memory_space<vmem>>, %arg3: memref<1x128xf32, #tpu.memory_space<vmem>>, %arg4: memref<8x128xf32, #tpu.memory_space<vmem>>) attributes {dimension_semantics = [#tpu.dimension_semantics<parallel>], iteration_bounds = array<i64: 1>, scalar_prefetch = 0 : i64, scratch_operands = 0 : i64, tpu.core_type = #tpu.core_type<tc>, window_params = [{transform_indices = @transform_0, window_bounds = array<i64: 8, 32>}, {pipeline_mode = #tpu.pipeline_mode<synchronous>, transform_indices = @transform_1, window_bounds = array<i64: 32, 128>}, {pipeline_mode = #tpu.pipeline_mode<synchronous>, transform_indices = @transform_2, window_bounds = array<i64: 1, 128>}, {transform_indices = @transform_3, window_bounds = array<i64: 8, 128>}]} {
    %c0 = arith.constant 0 : index
    %c0_0 = arith.constant 0 : index
    %0 = vector.load %arg1[%c0, %c0_0] : memref<8x32xf32, #tpu.memory_space<vmem>>, vector<8x32xf32>
    %c0_1 = arith.constant 0 : index
    %c0_2 = arith.constant 0 : index
    %1 = vector.load %arg2[%c0_1, %c0_2] : memref<32x128xf32, #tpu.memory_space<vmem>>, vector<32x128xf32>
    %cst = arith.constant dense<0.000000e+00> : vector<8x128xf32>
    %2 = tpu.matmul %0, %1, %cst {dimension_numbers = #tpu.dot_dimension_numbers<[1], [0], [0], [1], [0, 0, 1, 1], [], []>} : vector<8x32xf32>, vector<32x128xf32>, vector<8x128xf32> -> vector<8x128xf32>
    %c0_3 = arith.constant 0 : index
    %c0_4 = arith.constant 0 : index
    %3 = vector.load %arg3[%c0_3, %c0_4] : memref<1x128xf32, #tpu.memory_space<vmem>>, vector<1x128xf32>
    %4 = vector.broadcast %3 : vector<1x128xf32> to vector<8x128xf32>
    %5 = arith.addf %2, %4 : vector<8x128xf32>
    %cst_5 = arith.constant dense<0xFF800000> : vector<8xf32>
    %6 = vector.multi_reduction <maximumf>, %5, %cst_5 [1] : vector<8x128xf32> to vector<8xf32>
    %7 = vector.shape_cast %6 : vector<8xf32> to vector<8x1xf32>
    %8 = vector.broadcast %7 : vector<8x1xf32> to vector<8x128xf32>
    %9 = arith.subf %5, %8 : vector<8x128xf32>
    %10 = math.exp %9 : vector<8x128xf32>
    %cst_6 = arith.constant dense<0.000000e+00> : vector<8xf32>
    %11 = vector.multi_reduction <add>, %10, %cst_6 [1] : vector<8x128xf32> to vector<8xf32>
    %12 = vector.shape_cast %11 : vector<8xf32> to vector<8x1xf32>
    %13 = vector.broadcast %12 : vector<8x1xf32> to vector<8x128xf32>
    %14 = arith.divf %10, %13 : vector<8x128xf32>
    %c0_7 = arith.constant 0 : index
    %c0_8 = arith.constant 0 : index
    %15 = vector.load %arg4[%c0_7, %c0_8] : memref<8x128xf32, #tpu.memory_space<vmem>>, vector<8x128xf32>
    tpu.vector_store %arg4[%c0_7, %c0_8], %14 {strides = array<i32>} : memref<8x128xf32, #tpu.memory_space<vmem>>, vector<8x128xf32>,
    return
  }
  func.func @transform_0(%arg0: i32) -> (i32, i32) {
    %c0_i32 = arith.constant 0 : i32
    %c0_i32_0 = arith.constant 0 : i32
    return %arg0, %c0_i32 : i32, i32
  }
  func.func @transform_1(%arg0: i32) -> (i32, i32) {
    %c0_i32 = arith.constant 0 : i32
    %c0_i32_0 = arith.constant 0 : i32
    %c0_i32_1 = arith.constant 0 : i32
    return %c0_i32, %c0_i32_0 : i32, i32
  }
  func.func @transform_2(%arg0: i32) -> (i32, i32) {
    %c0_i32 = arith.constant 0 : i32
    %c0_i32_0 = arith.constant 0 : i32
    %c0_i32_1 = arith.constant 0 : i32
    return %c0_i32, %c0_i32_0 : i32, i32
  }
  func.func @transform_3(%arg0: i32) -> (i32, i32) {
    %c0_i32 = arith.constant 0 : i32
    %c0_i32_0 = arith.constant 0 : i32
    return %arg0, %c0_i32 : i32, i32
  }
}

</mosaic_0001>

<bundles_post_ra>
// kernel: tpu_custom_call.1
= control target key start
LH: loop header
LB: loop body
LE: loop exit
PB: predicated region body
PF: predicated region fallthrough
CT: control target
= control target key end

     0   :  { %8 = vsyncpa [#allocation3], 0  ;;  %s335_s0 = inlined_call_operand.hbm [shape: f32[8,32], index: 0, kind: input, shape index: {}]   ;;  %s336_s1 = inlined_call_operand.hbm [shape: f32[32,128], index: 1, kind: input, shape index: {}]   ;;  %s337_s2 = inlined_call_operand.vmem [shape: f32[1,128], index: 2, kind: input, shape index: {}]   ;;  %s338_s3 = inlined_call_operand.hbm [shape: f32[8,128], index: 3, kind: output, shape index: {}]  }
   0x1   :  { %9 = vsyncpa [#allocation6], 0 }
   0x2   :  { %10 = vsyncpa [#allocation4], 0  ;;  %s261_s12 = smov [#allocation2]   ;;  %s262_s14 = smov [#allocation5]  }
   0x3   :  { %s17_s13 = sshll.u32 %s261_s12, 4  ;;  %s26_s15 = sshll.u32 %s262_s14, 4  ;;  %s18_s13 = int_to_ptr.vmem [resolvable:$true] %s17_s13  ;;  %s289_s15 = int_to_ptr.vmem [resolvable:$true] %s26_s15 }
   0x4   :  { %s189_s18 = scalar_lea.hbm %s335_s0, 128 }
   0x5   :  { %p190_p0 = scmp.ne.s32.totalorder %s335_s0, %s189_s18  ;;  %p193_p1 = scmp.lt.u32.totalorder %s189_s18, %s335_s0 }
   0x7   :  { %p195_p2 = pnand %p193_p1, %p190_p0 }
   0x9   :  { %198 = shalt.err (!%p195_p2)
}
   0xa   :  { %s199_s23 = scalar_lea.vmem %s18_s13, 128  ;;  %p204_p4 = scmp.lt.s32.totalorder %s18_s13, %s18_s13 }
   0xb   :  { %p200_p3 = scmp.ne.s32.totalorder %s18_s13, %s199_s23  ;;  %p205_p5 = scmp.lt.s32.totalorder %s199_s23, %s199_s23 }
   0xd   :  { %p206_p6 = por %p205_p5, %p204_p4 }
   0xf   :  { %p207_p7 = pnand %p206_p6, %p200_p3 }
  0x11   :  { %210 = shalt.err (!%p207_p7)
}
  0x12   :  { %20 = dma.hbm_to_vmem [thread:$0]  %s335_s0, 128, %s18_s13, [#allocation3]  }
  0x13   :  { %s211_s28 = scalar_lea.hbm %s336_s1, 512 }
  0x14   :  { %p212_p8 = scmp.ne.s32.totalorder %s336_s1, %s211_s28  ;;  %p215_p9 = scmp.lt.u32.totalorder %s211_s28, %s336_s1 }
  0x16   :  { %p217_p10 = pnand %p215_p9, %p212_p8 }
  0x18   :  { %220 = shalt.err (!%p217_p10)
}
  0x19   :  { %s221_s6 = scalar_lea.vmem %s289_s15, 512  ;;  %p226_p12 = scmp.lt.s32.totalorder %s289_s15, %s289_s15 }
  0x1a   :  { %p222_p11 = scmp.ne.s32.totalorder %s289_s15, %s221_s6  ;;  %p227_p13 = scmp.lt.s32.totalorder %s221_s6, %s221_s6 }
  0x1c   :  { %p228_p0 = por %p227_p13, %p226_p12 }
  0x1e   :  { %p229_p1 = pnand %p228_p0, %p222_p11 }
  0x20   :  { %232 = shalt.err (!%p229_p1)
}
  0x21   :  { %s263_s0 = smov 128   ;;  %s264_s7 = smov 8  }
  0x22   :  { %32 = dma.hbm_to_vmem [thread:$0]  %s336_s1, 512, %s289_s15, [#allocation6], %s263_s0, %s263_s0, %s264_s7  }
  0x23   :  { %255 = dma.done.wait [#allocation3], 128  }
  0x24   :  { %256 = vsyncadd [#allocation3], 4294967168 }
  0x25   :  { %257 = dma.done.wait [#allocation6], 512  }
  0x26   :  { %258 = vsyncadd [#allocation6], 4294966784  ;;  %v265_v0 = vmov 0.0|0.0   ;;  %vm266_vm0 = vmmov 0   ;;  %v267_v1 = vmov 0.0   ;;  %v42_v2 = vld [vmem:[#allocation5] sm:$0xff] }
  0x27   :  { %171 = vmatprep.subr.bf16.mxu0 %v265_v0  ;;  %168 = vmatprep.mubr.msk.f32.mxu0 %vm266_vm0, %v267_v1  ;;  %v43_v3 = vld [vmem:[#allocation5 + $0x8] sm:$0xff]  ;;  %v44_v4 = vld [vmem:[#allocation5 + $0x10] sm:$0xff]  ;;  %v45_v6 = vld [vmem:[#allocation5 + $0x18] sm:$0xff]  ;;  %vm53_vm1 = vcmask 261120   ;;  %s268_s11 = smov [#allocation7]  }
  0x28   :  { %v172_v5 = vpack.c.bf16 %v43_v3, %v42_v2  ;;  %v175_v7 = vpack.c.bf16 %v45_v6, %v44_v4  ;;  %v41_v8 = vld [vmem:[#allocation2] sm:$0xff]  ;;  %s143_s12 = sshll.u32 %s268_s11, 4  ;;  %s144_s12 = int_to_ptr.vmem [resolvable:$true] %s143_s12 }
  0x29   :  { %v153_v9 = vld [vmem:[%s337_s2] ss:$0 sm:$0xff]  ;;  %s233_s13 = scalar_lea.vmem %s144_s12, 128  ;;  %p238_p3 = scmp.lt.s32.totalorder %s144_s12, %s144_s12 }
  0x2a   :  { %173 = vmatpush3.bf16.msra.mxu0 %v172_v5  ;;  %p234_p2 = scmp.ne.s32.totalorder %s144_s12, %s233_s13  ;;  %p239_p4 = scmp.lt.s32.totalorder %s233_s13, %s233_s13 }
  0x2b   :  { %174 = vmatprep.subr.bf16.mxu0 %v265_v0 }
  0x2c   :  { %p240_p5 = por %p239_p4, %p238_p3 }
  0x2e   :  { %176 = vmatpush3.bf16.msra.mxu0 %v175_v7  ;;  %p241_p6 = pnand %p240_p5, %p234_p2 }
  0x31   :  { %169 = vmatmul.mubr.msk.f32.vlgmr.msra.gmra.mrb[0].mxu0 %vm53_vm1, %v41_v8 }
 0x104   :  { %v123_v10 = vpop.f32.mrb[0].mxu0 }
 0x105   :  { %v124_v11 = vadd.f32 %v153_v9, %v123_v10  ;;  %v170_v12 = vpop.f32.mrb[1].mxu0 }
 0x107   :  { %127 = vmax.xlane.f32.xlu0 %v124_v11 }
 0x194   :  { %v128_v13 = vpop.xlane.xlu0 %127 }
 0x195   :  { %v129_v14 = vsub.f32 %v124_v11, %v128_v13 }
 0x197   :  { %v130_v15 = vmul.f32 1.442695, %v129_v14 }
 0x199   :  { %185 = vpow2.f32 %v130_v15 }
 0x1a3   :  { %v186_v16 = vpop.eup %185 }
 0x1a4   :  { %132 = vadd.xlane.f32.xlu0 %v186_v16 }
 0x231   :  { %v133_v17 = vpop.xlane.xlu0 %132 }
 0x232   :  { %187 = vrcp.f32 %v133_v17 }
 0x23c   :  { %v188_v18 = vpop.eup %187 }
 0x23d   :  { %v135_v19 = vmul.f32 %v188_v18, %v186_v16 }
 0x23f   :  { %136 = vst [vmem:[#allocation7] sm:$0xff] %v135_v19 }
 0x240   :  { %244 = shalt.err (!%p241_p6)
}
 0x241   :  { %s245_s15 = scalar_lea.hbm %s338_s3, 128 }
 0x242   :  { %p246_p7 = scmp.ne.s32.totalorder %s338_s3, %s245_s15  ;;  %p249_p8 = scmp.lt.u32.totalorder %s245_s15, %s338_s3 }
 0x244   :  { %p251_p9 = pnand %p249_p8, %p246_p7 }
 0x246   :  { %254 = shalt.err (!%p251_p9)
}
 0x247   :  { %146 = dma.vmem_to_hbm [thread:$0]  %s144_s12, 128, %s338_s3, [#allocation4]  }
 0x248   :  { %259 = dma.done.wait [#allocation4], 128  }
 0x249   :  { %260 = vsyncadd [#allocation4], 4294967168 }
 0x24a   :  { %150 = vsyncpa [#allocation3], 1 }
 0x24b   :  { %151 = vsyncpa [#allocation6], 1 }
 0x24c   :  { %152 = vsyncpa [#allocation4], 1 }

</bundles_post_ra>
